<compile_context>
chip_gen: v6e
topology: v6e:2x2x1
jax: 0.10.0
libtpu: 0.0.40
codegen_flags: <defaults>
</compile_context>

<pallas_src>
import functools

import jax
import jax.numpy as jnp
from jax.experimental import pallas as pl
from jax.experimental.pallas import tpu as pltpu


def _round_up(x: int, m: int) -> int:
    return ((x + m - 1) // m) * m


def ffn_kernel(x_ref, w1_ref, b1_ref, w2_ref, b2_ref, o_ref, acc_ref):
    # x_ref : (tm, Hp)    w1_ref: (Hp, tf)   b1_ref: (1, tf)
    # w2_ref: (tf, Hp)    b2_ref: (1, Hp)    o_ref : (tm, Hp)
    # acc_ref: (tm, Hp) f32 accumulator, resident across the F grid axis.
    f = pl.program_id(1)

    @pl.when(f == 0)
    def _():
        acc_ref[...] = jnp.zeros_like(acc_ref)

    # First matmul + bias + leaky_relu(slope=1e-4), f32 accumulation on MXU,
    # activation on the VPU (sits in VALU slack under the MXU).
    h = jnp.dot(x_ref[...], w1_ref[...],
                preferred_element_type=jnp.float32) + b1_ref[...]
    h = jnp.where(h > 0, h, 1e-4 * h)

    # Second matmul: accumulate partial contraction over this F tile.
    acc_ref[...] += jnp.dot(h.astype(w2_ref.dtype), w2_ref[...],
                            preferred_element_type=jnp.float32)

    @pl.when(f == pl.num_programs(1) - 1)
    def _():
        o_ref[...] = (acc_ref[...] + b2_ref[...]).astype(o_ref.dtype)


def _choose_tm(rows: int) -> int:
    """Row-tile size: 256 at scale; otherwise aim for >= 2 grid steps."""
    if rows >= 512:
        return 256
    half = max(8, _round_up(rows, 16) // 2)
    return _round_up(half, 8)


@functools.partial(jax.jit, static_argnames=("mxu_dtype",))
def feed_forward(x, w1, b1, w2, b2, mxu_dtype=None):
    """x: (B, S, H). w1: (H, F), b1: (F,), w2: (F, H), b2: (H,).

    Weights are stored pre-transposed ((in, out)) relative to PyTorch.
    mxu_dtype: optional narrower dtype (e.g. jnp.bfloat16) for matmul
    operands on v6e/v7x; accumulation stays f32.
    """
    B, S, H = x.shape
    F_dim = w1.shape[1]
    rows = B * S
    out_dtype = x.dtype

    # ---- lane-dense padding (done once, outside the kernel) -----------------
    Hp = _round_up(H, 128)
    Fp = _round_up(F_dim, 128)
    tf = min(Fp, 512)
    Fp = _round_up(Fp, tf)                 # make F-axis tiling exact
    tm = _choose_tm(rows)
    rows_p = _round_up(rows, tm)

    x2d = jnp.pad(x.reshape(rows, H), ((0, rows_p - rows), (0, Hp - H)))
    w1p = jnp.pad(w1, ((0, Hp - H), (0, Fp - F_dim)))
    w2p = jnp.pad(w2, ((0, Fp - F_dim), (0, Hp - H)))
    b1p = jnp.pad(b1, (0, Fp - F_dim)).reshape(1, Fp).astype(jnp.float32)
    b2p = jnp.pad(b2, (0, Hp - H)).reshape(1, Hp).astype(jnp.float32)

    if mxu_dtype is not None:              # cast once in the wrapper, not per step
        x2d = x2d.astype(mxu_dtype)
        w1p = w1p.astype(mxu_dtype)
        w2p = w2p.astype(mxu_dtype)

    grid = (rows_p // tm, Fp // tf)        # rows parallel, F reduction last

    out2d = pl.pallas_call(
        ffn_kernel,
        out_shape=jax.ShapeDtypeStruct((rows_p, Hp), out_dtype),
        grid_spec=pltpu.PrefetchScalarGridSpec(
            num_scalar_prefetch=0,
            grid=grid,
            in_specs=[
                pl.BlockSpec((tm, Hp), lambda i, f: (i, 0)),   # x rows (resident over f)
                pl.BlockSpec((Hp, tf), lambda i, f: (0, f)),   # W1 tile (streamed over f)
                pl.BlockSpec((1, tf), lambda i, f: (0, f)),    # b1 tile
                pl.BlockSpec((tf, Hp), lambda i, f: (f, 0)),   # W2 tile (streamed over f)
                pl.BlockSpec((1, Hp), lambda i, f: (0, 0)),    # b2 (tiny, constant)
            ],
            out_specs=pl.BlockSpec((tm, Hp), lambda i, f: (i, 0)),
            scratch_shapes=[pltpu.VMEM((tm, Hp), jnp.float32)],
        ),
        compiler_params=pltpu.CompilerParams(
            dimension_semantics=("parallel", "arbitrary"),
            vmem_limit_bytes=64 * 1024 * 1024,
        ),
    )(x2d, w1p, b1p, w2p, b2p)

    return out2d[:rows, :H].reshape(B, S, H)


if __name__ == "__main__":
    # Small, deterministic setup consistent with the module: hidden=32, ffn=64.
    batch, seq, hidden_dim, ffn_dim = 2, 8, 32, 64
    key = jax.random.PRNGKey(0)
    kx, k1, k2 = jax.random.split(key, 3)

    x = jax.random.normal(kx, (batch, seq, hidden_dim), dtype=jnp.float32)

    # kaiming_normal_(mode='fan_in') for Linear(in, out): std = sqrt(2 / fan_in).
    # PyTorch weight is (out, in); we store the transpose (in, out).
    w1 = (jax.random.normal(k1, (hidden_dim, ffn_dim), dtype=jnp.float32)
          * jnp.sqrt(2.0 / hidden_dim))
    b1 = jnp.zeros((ffn_dim,), dtype=jnp.float32)
    w2 = (jax.random.normal(k2, (ffn_dim, hidden_dim), dtype=jnp.float32)
          * jnp.sqrt(2.0 / ffn_dim))
    b2 = jnp.zeros((hidden_dim,), dtype=jnp.float32)

    out = feed_forward(x, w1, b1, w2, b2)   # f32 path for tight parity check
    jax.block_until_ready(out)

    # Pure-JAX reference.
    h_ref = x @ w1 + b1
    h_ref = jnp.where(h_ref > 0, h_ref, 1e-4 * h_ref)
    ref = h_ref @ w2 + b2
    assert out.shape == ref.shape
    assert jnp.allclose(out, ref, atol=1e-5, rtol=1e-5), "mismatch vs reference"

    print("KERNEL_OK")
</pallas_src>

<mosaic_0001>
module attributes {stable_mosaic.version = 11 : i64} {
  func.func @ffn_kernel(%arg0: i32, %arg1: i32, %arg2: memref<8x128xf32, #tpu.memory_space<vmem>>, %arg3: memref<128x128xf32, #tpu.memory_space<vmem>>, %arg4: memref<1x128xf32, #tpu.memory_space<vmem>>, %arg5: memref<128x128xf32, #tpu.memory_space<vmem>>, %arg6: memref<1x128xf32, #tpu.memory_space<vmem>>, %arg7: memref<8x128xf32, #tpu.memory_space<vmem>>, %arg8: memref<8x128xf32, #tpu.memory_space<vmem>>) attributes {dimension_semantics = [#tpu.dimension_semantics<parallel>, #tpu.dimension_semantics<arbitrary>], iteration_bounds = array<i64: 2, 1>, scalar_prefetch = 0 : i64, scratch_operands = 1 : i64, tpu.core_type = #tpu.core_type<tc>, window_params = [{transform_indices = @transform_0, window_bounds = array<i64: 8, 128>}, {transform_indices = @transform_1, window_bounds = array<i64: 128, 128>}, {transform_indices = @transform_2, window_bounds = array<i64: 1, 128>}, {transform_indices = @transform_3, window_bounds = array<i64: 128, 128>}, {pipeline_mode = #tpu.pipeline_mode<synchronous>, transform_indices = @transform_4, window_bounds = array<i64: 1, 128>}, {transform_indices = @transform_5, window_bounds = array<i64: 8, 128>}]} {
    %c0_i32 = arith.constant 0 : i32
    %0 = arith.cmpi eq, %arg1, %c0_i32 : i32
    %1 = arith.extui %0 : i1 to i32
    %c0_i32_0 = arith.constant 0 : i32
    %2 = arith.cmpi ne, %1, %c0_i32_0 : i32
    scf.if %2 {
      %cst_17 = arith.constant 0.000000e+00 : f32
      %22 = vector.broadcast %cst_17 : f32 to vector<8x128xf32>
      %c0_18 = arith.constant 0 : index
      %c0_19 = arith.constant 0 : index
      %23 = vector.load %arg8[%c0_18, %c0_19] : memref<8x128xf32, #tpu.memory_space<vmem>>, vector<8x128xf32>
      tpu.vector_store %arg8[%c0_18, %c0_19], %22 {strides = array<i32>} : memref<8x128xf32, #tpu.memory_space<vmem>>, vector<8x128xf32>,
    } else {
    }
    %c0 = arith.constant 0 : index
    %c0_1 = arith.constant 0 : index
    %3 = vector.load %arg2[%c0, %c0_1] : memref<8x128xf32, #tpu.memory_space<vmem>>, vector<8x128xf32>
    %c0_2 = arith.constant 0 : index
    %c0_3 = arith.constant 0 : index
    %4 = vector.load %arg3[%c0_2, %c0_3] : memref<128x128xf32, #tpu.memory_space<vmem>>, vector<128x128xf32>
    %cst = arith.constant dense<0.000000e+00> : vector<8x128xf32>
    %5 = tpu.matmul %3, %4, %cst {dimension_numbers = #tpu.dot_dimension_numbers<[1], [0], [0], [1], [0, 0, 1, 1], [], []>} : vector<8x128xf32>, vector<128x128xf32>, vector<8x128xf32> -> vector<8x128xf32>
    %c0_4 = arith.constant 0 : index
    %c0_5 = arith.constant 0 : index
    %6 = vector.load %arg4[%c0_4, %c0_5] : memref<1x128xf32, #tpu.memory_space<vmem>>, vector<1x128xf32>
    %7 = vector.broadcast %6 : vector<1x128xf32> to vector<8x128xf32>
    %8 = arith.addf %5, %7 : vector<8x128xf32>
    %cst_6 = arith.constant 0.000000e+00 : f32
    %9 = vector.broadcast %cst_6 : f32 to vector<8x128xf32>
    %10 = arith.cmpf ogt, %8, %9 : vector<8x128xf32>
    %cst_7 = arith.constant 9.99999974E-5 : f32
    %11 = vector.broadcast %cst_7 : f32 to vector<8x128xf32>
    %12 = arith.mulf %11, %8 : vector<8x128xf32>
    %13 = arith.select %10, %8, %12 : vector<8x128xi1>, vector<8x128xf32>
    %c0_8 = arith.constant 0 : index
    %c0_9 = arith.constant 0 : index
    %14 = vector.load %arg8[%c0_8, %c0_9] : memref<8x128xf32, #tpu.memory_space<vmem>>, vector<8x128xf32>
    %c0_10 = arith.constant 0 : index
    %c0_11 = arith.constant 0 : index
    %15 = vector.load %arg5[%c0_10, %c0_11] : memref<128x128xf32, #tpu.memory_space<vmem>>, vector<128x128xf32>
    %cst_12 = arith.constant dense<0.000000e+00> : vector<8x128xf32>
    %16 = tpu.matmul %13, %15, %cst_12 {dimension_numbers = #tpu.dot_dimension_numbers<[1], [0], [0], [1], [0, 0, 1, 1], [], []>} : vector<8x128xf32>, vector<128x128xf32>, vector<8x128xf32> -> vector<8x128xf32>
    %17 = arith.addf %14, %16 : vector<8x128xf32>
    %c0_13 = arith.constant 0 : index
    %c0_14 = arith.constant 0 : index
    %18 = vector.load %arg8[%c0_13, %c0_14] : memref<8x128xf32, #tpu.memory_space<vmem>>, vector<8x128xf32>
    tpu.vector_store %arg8[%c0_13, %c0_14], %17 {strides = array<i32>} : memref<8x128xf32, #tpu.memory_space<vmem>>, vector<8x128xf32>,
    %c0_i32_15 = arith.constant 0 : i32
    %19 = arith.cmpi eq, %arg1, %c0_i32_15 : i32
    %20 = arith.extui %19 : i1 to i32
    %c0_i32_16 = arith.constant 0 : i32
    %21 = arith.cmpi ne, %20, %c0_i32_16 : i32
    scf.if %21 {
      %c0_17 = arith.constant 0 : index
      %c0_18 = arith.constant 0 : index
      %22 = vector.load %arg8[%c0_17, %c0_18] : memref<8x128xf32, #tpu.memory_space<vmem>>, vector<8x128xf32>
      %c0_19 = arith.constant 0 : index
      %c0_20 = arith.constant 0 : index
      %23 = vector.load %arg6[%c0_19, %c0_20] : memref<1x128xf32, #tpu.memory_space<vmem>>, vector<1x128xf32>
      %24 = vector.broadcast %23 : vector<1x128xf32> to vector<8x128xf32>
      %25 = arith.addf %22, %24 : vector<8x128xf32>
      %c0_21 = arith.constant 0 : index
      %c0_22 = arith.constant 0 : index
      %26 = vector.load %arg7[%c0_21, %c0_22] : memref<8x128xf32, #tpu.memory_space<vmem>>, vector<8x128xf32>
      tpu.vector_store %arg7[%c0_21, %c0_22], %25 {strides = array<i32>} : memref<8x128xf32, #tpu.memory_space<vmem>>, vector<8x128xf32>,
    } else {
    }
    return
  }
  func.func @transform_0(%arg0: i32, %arg1: i32) -> (i32, i32) {
    %c0_i32 = arith.constant 0 : i32
    %c0_i32_0 = arith.constant 0 : i32
    return %arg0, %c0_i32 : i32, i32
  }
  func.func @transform_1(%arg0: i32, %arg1: i32) -> (i32, i32) {
    %c0_i32 = arith.constant 0 : i32
    %c0_i32_0 = arith.constant 0 : i32
    return %c0_i32, %arg1 : i32, i32
  }
  func.func @transform_2(%arg0: i32, %arg1: i32) -> (i32, i32) {
    %c0_i32 = arith.constant 0 : i32
    %c0_i32_0 = arith.constant 0 : i32
    return %c0_i32, %arg1 : i32, i32
  }
  func.func @transform_3(%arg0: i32, %arg1: i32) -> (i32, i32) {
    %c0_i32 = arith.constant 0 : i32
    %c0_i32_0 = arith.constant 0 : i32
    return %arg1, %c0_i32 : i32, i32
  }
  func.func @transform_4(%arg0: i32, %arg1: i32) -> (i32, i32) {
    %c0_i32 = arith.constant 0 : i32
    %c0_i32_0 = arith.constant 0 : i32
    %c0_i32_1 = arith.constant 0 : i32
    return %c0_i32, %c0_i32_0 : i32, i32
  }
  func.func @transform_5(%arg0: i32, %arg1: i32) -> (i32, i32) {
    %c0_i32 = arith.constant 0 : i32
    %c0_i32_0 = arith.constant 0 : i32
    return %arg0, %c0_i32 : i32, i32
  }
}

</mosaic_0001>

<bundles_post_ra>
// kernel: feed_forward.1
= control target key start
LH: loop header
LB: loop body
LE: loop exit
PB: predicated region body
PF: predicated region fallthrough
CT: control target
= control target key end

     0   :  { %s793_s18 = smov 0   ;;  %s795_s19 = smov 0   ;;  %s973_s0 = inlined_call_operand.vmem [shape: f32[16,128], index: 0, kind: input, shape index: {}]   ;;  %s974_s1 = inlined_call_operand.vmem [shape: f32[128,128], index: 1, kind: input, shape index: {}]   ;;  %s975_s2 = inlined_call_operand.vmem [shape: f32[1,128], index: 2, kind: input, shape index: {}]   ;;  %s976_s3 = inlined_call_operand.vmem [shape: f32[128,128], index: 3, kind: input, shape index: {}]   ;;  %s977_s4 = inlined_call_operand.vmem [shape: f32[1,128], index: 4, kind: input, shape index: {}]   ;;  %s978_s5 = inlined_call_operand.vmem [shape: f32[16,128], index: 5, kind: output, shape index: {}]  }
   0x1   :  { %s797_s20 = smov 0  }
   0x2 LB: > { %s27_s21 = sadd.s32 1, %s755_s19  ;;  %p600_p0 = scmp.ge.s32.totalorder %s759_s20, 1  ;;  %s759_s20 = sphi %s797_s20, %s15_s20   ;;  %s755_s19 = sphi %s795_s19, %s980_s19   ;;  %s751_s18 = sphi %s793_s18, %s979_s18  }
   0x3   : > { %p29_p1 = scmp.ge.s32.totalorder %s27_s21, 2  ;;  %p226_p2 = scmp.lt.s32.totalorder %s759_s20, 3 }
   0x5   : > { %s982_s21 = smov (%p29_p1, %s27_s21), 0  ;;  %p227_p3 = pnand %p600_p0, %p226_p2 }
   0x6   : > { %p264_p4 = scmp.lt.s32.totalorder (!%p227_p3), %s751_s18, 1 }
   0x7   : > { %230 = sbr.rel (%p227_p3) target bundleno = 439 (0x1b7), region = 40 }
   0xc   : > { %v306_v0 = vld [vmem:[%s974_s1 + $0x78] sm:$0xff]  ;;  %v761_v1 = vmov 0.0   ;;  %v305_v2 = vld [vmem:[%s974_s1 + $0x70] sm:$0xff]  ;;  %vm762_vm0 = vmmov 0   ;;  %v304_v3 = vld [vmem:[%s974_s1 + $0x68] sm:$0xff]  ;;  %s984_s18 = smov (!%p264_p4, %s751_s18), 1 }
   0xd   : > { %641 = vmatprep.subr.mxu0 %v761_v1  ;;  %673 = vmatprep.mubr.msk.f32.mxu0 %vm762_vm0, %v761_v1  ;;  %v303_v4 = vld [vmem:[%s974_s1 + $0x60] sm:$0xff]  ;;  %v403_v5 = vld [vmem:[%s976_s3 + $0x78] sm:$0xff]  ;;  %v402_v6 = vld [vmem:[%s976_s3 + $0x70] sm:$0xff]  ;;  %s601_s28 = sshll.u32 %s984_s18, 3 }
   0xe   : > { %642 = vmatpush3.msra.mxu0 %v306_v0  ;;  %676 = vmatprep.subr.mxu1 %v761_v1  ;;  %v302_v7 = vld [vmem:[%s974_s1 + $0x58] sm:$0xff]  ;;  %v401_v8 = vld [vmem:[%s976_s3 + $0x68] sm:$0xff]  ;;  %v301_v9 = vld [vmem:[%s974_s1 + $0x50] sm:$0xff]  ;;  %s267_s12 = scalar_lea.vmem %s973_s0, %s601_s28  ;;  %s284_s9 = scalar_lea.vmem %s978_s5, %s601_s28 }
   0xf   : > { %643 = vmatprep.subr.mxu0 %v761_v1  ;;  %708 = vmatprep.mubr.msk.f32.mxu1 %vm762_vm0, %v761_v1  ;;  %v400_v10 = vld [vmem:[%s976_s3 + $0x60] sm:$0xff]  ;;  %v300_v11 = vld [vmem:[%s974_s1 + $0x48] sm:$0xff]  ;;  %v399_v12 = vld [vmem:[%s976_s3 + $0x58] sm:$0xff] }
  0x10   : > { %644 = vmatpush3.msra.mxu0 %v305_v2  ;;  %677 = vmatpush3.msra.mxu1 %v403_v5  ;;  %v299_v13 = vld [vmem:[%s974_s1 + $0x40] sm:$0xff]  ;;  %v398_v14 = vld [vmem:[%s976_s3 + $0x50] sm:$0xff]  ;;  %v298_v15 = vld [vmem:[%s974_s1 + $0x38] sm:$0xff] }
  0x11   : > { %645 = vmatprep.subr.mxu0 %v761_v1  ;;  %678 = vmatprep.subr.mxu1 %v761_v1  ;;  %v397_v16 = vld [vmem:[%s976_s3 + $0x48] sm:$0xff]  ;;  %v297_v17 = vld [vmem:[%s974_s1 + $0x30] sm:$0xff]  ;;  %v396_v18 = vld [vmem:[%s976_s3 + $0x40] sm:$0xff] }
  0x12   : > { %646 = vmatpush3.msra.mxu0 %v304_v3  ;;  %679 = vmatpush3.msra.mxu1 %v402_v6  ;;  %v296_v19 = vld [vmem:[%s974_s1 + $0x28] sm:$0xff]  ;;  %v395_v20 = vld [vmem:[%s976_s3 + $0x38] sm:$0xff]  ;;  %v295_v21 = vld [vmem:[%s974_s1 + $0x20] sm:$0xff] }
  0x13   : > { %647 = vmatprep.subr.mxu0 %v761_v1  ;;  %680 = vmatprep.subr.mxu1 %v761_v1  ;;  %v394_v22 = vld [vmem:[%s976_s3 + $0x30] sm:$0xff]  ;;  %v294_v23 = vld [vmem:[%s974_s1 + $0x18] sm:$0xff]  ;;  %v393_v24 = vld [vmem:[%s976_s3 + $0x28] sm:$0xff] }
  0x14   : > { %648 = vmatpush3.msra.mxu0 %v303_v4  ;;  %681 = vmatpush3.msra.mxu1 %v401_v8  ;;  %v293_v25 = vld [vmem:[%s974_s1 + $0x10] sm:$0xff]  ;;  %v392_v26 = vld [vmem:[%s976_s3 + $0x20] sm:$0xff]  ;;  %v292_v27 = vld [vmem:[%s974_s1 + $0x8] sm:$0xff] }
  0x15   : > { %649 = vmatprep.subr.mxu0 %v761_v1  ;;  %682 = vmatprep.subr.mxu1 %v761_v1  ;;  %v391_v28 = vld [vmem:[%s976_s3 + $0x18] sm:$0xff]  ;;  %v291_v29 = vld [vmem:[%s974_s1] sm:$0xff]  ;;  %v390_v31 = vld [vmem:[%s976_s3 + $0x10] sm:$0xff] }
  0x16   : > { %650 = vmatpush3.msra.mxu0 %v302_v7  ;;  %683 = vmatpush3.msra.mxu1 %v400_v10  ;;  %v290_v30 = vld [vmem:[%s267_s12] sm:$0xff]  ;;  %v389_v32 = vld [vmem:[%s976_s3 + $0x8] sm:$0xff] }
  0x17   : > { %651 = vmatprep.subr.mxu0 %v761_v1  ;;  %684 = vmatprep.subr.mxu1 %v761_v1  ;;  %v388_v33 = vld [vmem:[%s976_s3] sm:$0xff] }
  0x18   : > { %652 = vmatpush3.msra.mxu0 %v301_v9  ;;  %685 = vmatpush3.msra.mxu1 %v399_v12  ;;  %v603_v34 = vld [vmem:[%s975_s2] ss:$0 sm:$0xff] }
  0x19   : > { %653 = vmatprep.subr.mxu0 %v761_v1  ;;  %686 = vmatprep.subr.mxu1 %v761_v1  ;;  %v604_v40 = vld [vmem:[%s977_s4] ss:$0 sm:$0xff] }
  0x1a   : > { %654 = vmatpush3.msra.mxu0 %v300_v11  ;;  %687 = vmatpush3.msra.mxu1 %v398_v14 }
  0x1b   : > { %655 = vmatprep.subr.mxu0 %v761_v1  ;;  %688 = vmatprep.subr.mxu1 %v761_v1 }
  0x1c   : > { %656 = vmatpush3.msra.mxu0 %v299_v13  ;;  %689 = vmatpush3.msra.mxu1 %v397_v16 }
  0x1d   : > { %657 = vmatprep.subr.mxu0 %v761_v1  ;;  %690 = vmatprep.subr.mxu1 %v761_v1 }
  0x1e   : > { %658 = vmatpush3.msra.mxu0 %v298_v15  ;;  %691 = vmatpush3.msra.mxu1 %v396_v18 }
  0x1f   : > { %659 = vmatprep.subr.mxu0 %v761_v1  ;;  %692 = vmatprep.subr.mxu1 %v761_v1 }
  0x20   : > { %660 = vmatpush3.msra.mxu0 %v297_v17  ;;  %693 = vmatpush3.msra.mxu1 %v395_v20 }
  0x21   : > { %661 = vmatprep.subr.mxu0 %v761_v1  ;;  %694 = vmatprep.subr.mxu1 %v761_v1 }
  0x22   : > { %662 = vmatpush3.msra.mxu0 %v296_v19  ;;  %695 = vmatpush3.msra.mxu1 %v394_v22 }
  0x23   : > { %663 = vmatprep.subr.mxu0 %v761_v1  ;;  %696 = vmatprep.subr.mxu1 %v761_v1 }
  0x24   : > { %664 = vmatpush3.msra.mxu0 %v295_v21  ;;  %697 = vmatpush3.msra.mxu1 %v393_v24 }
  0x25   : > { %665 = vmatprep.subr.mxu0 %v761_v1  ;;  %698 = vmatprep.subr.mxu1 %v761_v1 }
  0x26   : > { %666 = vmatpush3.msra.mxu0 %v294_v23  ;;  %699 = vmatpush3.msra.mxu1 %v392_v26 }
  0x27   : > { %667 = vmatprep.subr.mxu0 %v761_v1  ;;  %700 = vmatprep.subr.mxu1 %v761_v1 }
  0x28   : > { %668 = vmatpush3.msra.mxu0 %v293_v25  ;;  %701 = vmatpush3.msra.mxu1 %v391_v28 }
  0x29   : > { %669 = vmatprep.subr.mxu0 %v761_v1  ;;  %702 = vmatprep.subr.mxu1 %v761_v1 }
  0x2a   : > { %670 = vmatpush3.msra.mxu0 %v292_v27  ;;  %703 = vmatpush3.msra.mxu1 %v390_v31 }
  0x2b   : > { %671 = vmatprep.subr.mxu0 %v761_v1  ;;  %704 = vmatprep.subr.mxu1 %v761_v1 }
  0x2c   : > { %672 = vmatpush3.msra.mxu0 %v291_v29  ;;  %705 = vmatpush3.msra.mxu1 %v389_v32 }
  0x2d   : > { %674 = vmatmul.mubr.f32.vlgmr.msra.gmra.mxu0 %v290_v30  ;;  %706 = vmatprep.subr.mxu1 %v761_v1 }
  0x2e   : > { %707 = vmatpush3.msra.mxu1 %v388_v33 }
  0xed   : > { %v380_v35 = vpop.f32.mrf.mxu0 }
  0xee   : > { %v381_v36 = vadd.f32 %v603_v34, %v380_v35 }
  0xef   : > { %v675_v37 = vpop.f32.mrf.mxu0 }
  0xf0   : > { %v385_v38 = vmul.f32 0.0001, %v381_v36  ;;  %vm384_vm1 = vcmp.gt.f32.partialorder %v381_v36, 0.0 }
  0xf2   : > { %v386_v39 = vsel %vm384_vm1, %v381_v36, %v385_v38 }
  0xf3   : > { %709 = vmatmul.mubr.f32.vlgmr.msra.gmra.mxu1 %v386_v39 }
 0x1b3   : > { %v470_v41 = vpop.f32.mrf.mxu1 }
 0x1b4   : > { %v487_v42 = vadd.f32 %v604_v40, %v470_v41 }
 0x1b5   : > { %v710_v43 = vpop.f32.mrf.mxu1 }
 0x1b6   : > { %488 = vst [vmem:[%s284_s9] sm:$0xff] %v487_v42 }
 0x1b7 PF: > { %s15_s20 = sadd.s32 1, %s759_s20   ;;  %s979_s18 = smov %s755_s19 }
 0x1b8   : > { %p12_p5 = scmp.ge.s32.totalorder %s15_s20, 4   ;;  %s980_s19 = smov %s982_s21 }
 0x1ba   :  { %14 = sbr.rel (!%p12_p5) target bundleno = 2 (0x2), region = 87 }

</bundles_post_ra>
